<compile_context>
chip_gen: v5e
topology: v5e:2x2
jax: 0.10.0
libtpu: 0.0.40
codegen_flags: <defaults>
</compile_context>

<pallas_src>
import functools

import jax
import jax.numpy as jnp
import numpy as np
from jax.experimental import pallas as pl
from jax.experimental.pallas import tpu as pltpu

_HID = (64, 128, 128, 64)       # per-head hidden widths (fixed by the module)
_OUT_PAD = 128                  # lane-dense padded output width (mu|sigma|0s)
_CAT_WIDTHS = (128, 256, 256, 128, _OUT_PAD)
_BIAS_TOTAL = sum(_CAT_WIDTHS)  # 896 = 7 * 128

_SINGLE_TILE_MAX = 256          # n <= this -> single grid step
_MAX_TILE = 2048                # upper bound on batch-tile rows


def _round_up(x, m):
    return ((x + m - 1) // m) * m


def _use_bf16_act():
    """bf16 tanh/sigmoid only where the EUP/VPU have a native bf16 path."""
    try:
        kind = jax.devices()[0].device_kind.lower()
    except Exception:
        return False
    return ("v6" in kind) or ("v7" in kind)


def _choose_block_n(n):
    """Batch-tile policy (review items 1 & 2)."""
    if n <= _SINGLE_TILE_MAX:
        return n
    # >=2 grid steps for anything beyond one small tile (both v7x TCs get
    # work), with tiles up to 2048 rows to amortize per-step overhead.
    return min(_MAX_TILE, max(256, _round_up(pl.cdiv(n, 2), 8)))


def _resident_spec(shape):
    """BlockSpec for a grid-invariant (constant index_map) input.

    Single-buffered: the block is identical on every grid step, so the
    default double-buffering is pure VMEM / descriptor waste.
    """
    index_map = lambda i: (0,) * len(shape)
    try:
        return pl.BlockSpec(shape, index_map, pipeline_mode=pl.Buffered(1))
    except TypeError:   # older jax without pipeline_mode on BlockSpec
        return pl.BlockSpec(shape, index_map)


# -----------------------------------------------------------------------------
# Fused Pallas kernel: both heads, 5 block-diagonal layers, 5 MXU matmuls.
# -----------------------------------------------------------------------------
def _actor_fused_kernel(x_ref, w1_ref, w2_ref, w3_ref, w4_ref, w5_ref, b_ref,
                        out_ref, *, bf16_act):
    bf16 = jnp.bfloat16
    f32 = jnp.float32

    def act(z_f32):
        # tanh epilogue in bf16 on v6e/v7x (bf16 EUP, no extra cast before the
        # next dot); f32 on v5e (no bf16 EUP) then cast for the MXU.
        if bf16_act:
            return jnp.tanh(z_f32.astype(bf16))
        return jnp.tanh(z_f32).astype(bf16)

    h = x_ref[...].astype(bf16)
    # L1: [obs] -> [128]   (mu cols 0:64 | sigma cols 64:128)
    h = act(jnp.dot(h, w1_ref[...], preferred_element_type=f32) + b_ref[:, 0:128])
    # L2: [128] -> [256]   block-diagonal
    h = act(jnp.dot(h, w2_ref[...], preferred_element_type=f32) + b_ref[:, 128:384])
    # L3: [256] -> [256]   block-diagonal
    h = act(jnp.dot(h, w3_ref[...], preferred_element_type=f32) + b_ref[:, 384:640])
    # L4: [256] -> [128]   block-diagonal
    h = act(jnp.dot(h, w4_ref[...], preferred_element_type=f32) + b_ref[:, 640:768])
    # L5: [128] -> [128]   (mu cols 0:A | sigma cols A:2A | zero padding)
    z = jnp.dot(h, w5_ref[...], preferred_element_type=f32) + b_ref[:, 768:896]
    if bf16_act:
        z = z.astype(bf16)
    out_ref[...] = jax.nn.sigmoid(z).astype(out_ref.dtype)


# -----------------------------------------------------------------------------
# Wrapper: one pallas_call, batch-tiled grid (parallel across cores).
# -----------------------------------------------------------------------------
@functools.partial(jax.jit, static_argnames=("bf16_act",))
def _fused_forward(x, w1, w2, w3, w4, w5, b_all, *, bf16_act):
    n, obs = x.shape
    block_n = _choose_block_n(n)
    grid = (pl.cdiv(n, block_n),)

    in_specs = (
        [pl.BlockSpec((block_n, obs), lambda i: (i, 0))]
        + [_resident_spec(w.shape) for w in (w1, w2, w3, w4, w5)]
        + [_resident_spec(b_all.shape)]
    )
    out_spec = pl.BlockSpec((block_n, _OUT_PAD), lambda i: (i, 0))

    flops = 2 * n * (obs * 128 + 128 * 256 + 256 * 256 + 256 * 128 + 128 * 128)
    transcendentals = n * _BIAS_TOTAL
    bytes_accessed = (x.size * x.dtype.itemsize
                      + sum(w.size * w.dtype.itemsize
                            for w in (w1, w2, w3, w4, w5))
                      + b_all.size * b_all.dtype.itemsize
                      + n * _OUT_PAD * 2)               # bf16 output slab

    compiler_kwargs = dict(dimension_semantics=("parallel",))
    if block_n >= 1024:
        # Big tiles keep several live f32 [block_n, 256] intermediates; raise
        # scoped VMEM (v5e default is 16 MiB) but stay well under v7x's
        # 64 MiB physical cap.
        compiler_kwargs["vmem_limit_bytes"] = 48 * 1024 * 1024

    return pl.pallas_call(
        functools.partial(_actor_fused_kernel, bf16_act=bf16_act),
        out_shape=jax.ShapeDtypeStruct((n, _OUT_PAD), jnp.bfloat16),
        grid=grid,
        in_specs=in_specs,
        out_specs=out_spec,
        compiler_params=pltpu.CompilerParams(**compiler_kwargs),
        cost_estimate=pl.CostEstimate(flops=flops,
                                      transcendentals=transcendentals,
                                      bytes_accessed=bytes_accessed),
    )(x, w1, w2, w3, w4, w5, b_all)


# -----------------------------------------------------------------------------
# Parameter construction (orthogonal weights, gain sqrt(2), zero biases —
# mirroring Grid_initializer) and two-head fusion into block-diagonal layers.
# -----------------------------------------------------------------------------
def _make_head_params(key, num_observations, num_actions):
    dims = [num_observations, *_HID, num_actions]
    ortho = jax.nn.initializers.orthogonal(scale=np.sqrt(2.0))
    keys = jax.random.split(key, len(dims) - 1)
    params = []
    for i in range(len(dims) - 1):
        # Stored [in, out] so the kernel computes x @ W; bf16 for the MXU.
        w = ortho(keys[i], (dims[i], dims[i + 1]), jnp.float32).astype(jnp.bfloat16)
        b = jnp.zeros((1, dims[i + 1]), jnp.float32)
        params.append((w, b))
    return params


def _block_diag(a, b):
    out = jnp.zeros((a.shape[0] + b.shape[0], a.shape[1] + b.shape[1]), a.dtype)
    out = out.at[:a.shape[0], :a.shape[1]].set(a)
    out = out.at[a.shape[0]:, a.shape[1]:].set(b)
    return out


def _fuse_heads(mu_params, sigma_params, num_actions, obs_kernel):
    (w1m, b1m), (w2m, b2m), (w3m, b3m), (w4m, b4m), (w5m, b5m) = mu_params
    (w1s, b1s), (w2s, b2s), (w3s, b3s), (w4s, b4s), (w5s, b5s) = sigma_params
    a = num_actions
    obs = w1m.shape[0]

    w1 = jnp.concatenate([w1m, w1s], axis=1)           # [obs, 128]
    if obs_kernel != obs:                               # lane-aligned obs pad
        w1 = jnp.zeros((obs_kernel, 128), jnp.bfloat16).at[:obs, :].set(w1)
    b1 = jnp.concatenate([b1m, b1s], axis=1)            # [1, 128]
    w2 = _block_diag(w2m, w2s)                           # [128, 256]
    b2 = jnp.concatenate([b2m, b2s], axis=1)             # [1, 256]
    w3 = _block_diag(w3m, w3s)                            # [256, 256]
    b3 = jnp.concatenate([b3m, b3s], axis=1)               # [1, 256]
    w4 = _block_diag(w4m, w4s)                               # [256, 128]
    b4 = jnp.concatenate([b4m, b4s], axis=1)                  # [1, 128]

    # Final layer, padded to a full 128-lane output slab.
    w5 = jnp.zeros((128, _OUT_PAD), jnp.bfloat16)
    w5 = w5.at[:64, :a].set(w5m)
    w5 = w5.at[64:, a:2 * a].set(w5s)
    b5 = jnp.zeros((1, _OUT_PAD), jnp.float32)
    b5 = b5.at[:, :a].set(b5m)
    b5 = b5.at[:, a:2 * a].set(b5s)

    b_all = jnp.concatenate([b1, b2, b3, b4, b5], axis=1)   # [1, 896] f32
    assert b_all.shape[1] == _BIAS_TOTAL
    return (w1, w2, w3, w4, w5), b_all


class ActorPallas:
    """JAX/Pallas equivalent of the PyTorch `Actor` module (fused two-head kernel)."""

    def __init__(self, num_observations, num_actions, key):
        assert 2 * num_actions <= _OUT_PAD, "num_actions too large for padded output"
        self.num_observations = num_observations
        self.num_actions = num_actions
        # Lane-align obs only once it grows past one full vreg lane width;
        # tiny widths (obs=8) stay unpadded to keep x HBM traffic minimal.
        self._obs_kernel = (_round_up(num_observations, 128)
                            if num_observations > 128 else num_observations)
        self._bf16_act = _use_bf16_act()
        k_mu, k_sigma = jax.random.split(key)
        self.mu_params = _make_head_params(k_mu, num_observations, num_actions)
        self.sigma_params = _make_head_params(k_sigma, num_observations, num_actions)
        self.cat_weights, self.b_all = _fuse_heads(
            self.mu_params, self.sigma_params, num_actions, self._obs_kernel)

    def __call__(self, x_in):
        x = jnp.asarray(x_in, jnp.float32)
        n, obs = x.shape
        # Pad the batch to a full 8-row sublane (tiny RL-inference case) and
        # obs to the kernel's (possibly lane-aligned) width.
        n_pad = _round_up(max(n, 8), 8)
        pad_rows = n_pad - n
        pad_cols = self._obs_kernel - obs
        if pad_rows or pad_cols:
            x = jnp.pad(x, ((0, pad_rows), (0, pad_cols)))
        out = _fused_forward(x, *self.cat_weights, self.b_all,
                             bf16_act=self._bf16_act)
        a = self.num_actions
        mu = out[:n, :a].astype(jnp.float32)
        sigma = out[:n, a:2 * a].astype(jnp.float32)
        return mu, sigma


# -----------------------------------------------------------------------------
# Pure-JAX per-head reference mirroring the kernel's dtype policy.
# -----------------------------------------------------------------------------
def _ref_head(x, params, bf16_act):
    bf16, f32 = jnp.bfloat16, jnp.float32
    h = jnp.asarray(x, f32).astype(bf16)
    for (w, b) in params[:-1]:
        z = jnp.dot(h, w, preferred_element_type=f32) + b
        h = jnp.tanh(z.astype(bf16)) if bf16_act else jnp.tanh(z).astype(bf16)
    w, b = params[-1]
    z = jnp.dot(h, w, preferred_element_type=f32) + b
    if bf16_act:
        z = z.astype(bf16)
    return jax.nn.sigmoid(z)


if __name__ == "__main__":
    key = jax.random.PRNGKey(0)
    k_params, k_x, k_x2 = jax.random.split(key, 3)

    num_observations = 8
    num_actions = 4
    batch = 2

    actor = ActorPallas(num_observations, num_actions, k_params)
    x = jax.random.normal(k_x, (batch, num_observations), dtype=jnp.float32)

    mu_out, sigma_out = actor(x)
    mu_out = jax.block_until_ready(mu_out)
    sigma_out = jax.block_until_ready(sigma_out)

    assert mu_out.shape == (batch, num_actions)
    assert sigma_out.shape == (batch, num_actions)

    # Correctness vs a per-head JAX reference with matching dtype policy
    # (validates that the block-diagonal fusion keeps the heads independent).
    # bf16 output slab + bf16 epilogue => a slightly looser tolerance.
    mu_ref = _ref_head(x, actor.mu_params, actor._bf16_act)
    sigma_ref = _ref_head(x, actor.sigma_params, actor._bf16_act)
    np.testing.assert_allclose(np.asarray(mu_out), np.asarray(mu_ref),
                               rtol=2e-2, atol=2e-2)
    np.testing.assert_allclose(np.asarray(sigma_out), np.asarray(sigma_ref),
                               rtol=2e-2, atol=2e-2)

    # Also exercise the multi-step grid path (>=2 tiles, partial last tile).
    x_big = jax.random.normal(k_x2, (300, num_observations), dtype=jnp.float32)
    mu_b, sigma_b = actor(x_big)
    mu_b = jax.block_until_ready(mu_b)
    sigma_b = jax.block_until_ready(sigma_b)
    np.testing.assert_allclose(
        np.asarray(mu_b),
        np.asarray(_ref_head(x_big, actor.mu_params, actor._bf16_act)),
        rtol=2e-2, atol=2e-2)
    np.testing.assert_allclose(
        np.asarray(sigma_b),
        np.asarray(_ref_head(x_big, actor.sigma_params, actor._bf16_act)),
        rtol=2e-2, atol=2e-2)

    print("KERNEL_OK")
</pallas_src>

<mosaic_0001>
module attributes {stable_mosaic.version = 11 : i64} {
  func.func @_actor_fused_kernel(%arg0: i32, %arg1: memref<8x8xf32, #tpu.memory_space<vmem>>, %arg2: memref<8x128xbf16, #tpu.memory_space<vmem>>, %arg3: memref<128x256xbf16, #tpu.memory_space<vmem>>, %arg4: memref<256x256xbf16, #tpu.memory_space<vmem>>, %arg5: memref<256x128xbf16, #tpu.memory_space<vmem>>, %arg6: memref<128x128xbf16, #tpu.memory_space<vmem>>, %arg7: memref<1x896xf32, #tpu.memory_space<vmem>>, %arg8: memref<8x128xbf16, #tpu.memory_space<vmem>>) attributes {dimension_semantics = [#tpu.dimension_semantics<parallel>], iteration_bounds = array<i64: 1>, scalar_prefetch = 0 : i64, scratch_operands = 0 : i64, tpu.core_type = #tpu.core_type<tc>, window_params = [{transform_indices = @transform_0, window_bounds = array<i64: 8, 8>}, {pipeline_mode = #tpu.pipeline_mode<synchronous>, transform_indices = @transform_1, window_bounds = array<i64: 8, 128>}, {pipeline_mode = #tpu.pipeline_mode<synchronous>, transform_indices = @transform_2, window_bounds = array<i64: 128, 256>}, {pipeline_mode = #tpu.pipeline_mode<synchronous>, transform_indices = @transform_3, window_bounds = array<i64: 256, 256>}, {pipeline_mode = #tpu.pipeline_mode<synchronous>, transform_indices = @transform_4, window_bounds = array<i64: 256, 128>}, {pipeline_mode = #tpu.pipeline_mode<synchronous>, transform_indices = @transform_5, window_bounds = array<i64: 128, 128>}, {pipeline_mode = #tpu.pipeline_mode<synchronous>, transform_indices = @transform_6, window_bounds = array<i64: 1, 896>}, {transform_indices = @transform_7, window_bounds = array<i64: 8, 128>}]} {
    %c0 = arith.constant 0 : index
    %c0_0 = arith.constant 0 : index
    %0 = vector.load %arg1[%c0, %c0_0] : memref<8x8xf32, #tpu.memory_space<vmem>>, vector<8x8xf32>
    %1 = arith.truncf %0 : vector<8x8xf32> to vector<8x8xbf16>
    %c0_1 = arith.constant 0 : index
    %c0_2 = arith.constant 0 : index
    %2 = vector.load %arg2[%c0_1, %c0_2] : memref<8x128xbf16, #tpu.memory_space<vmem>>, vector<8x128xbf16>
    %cst = arith.constant dense<0.000000e+00> : vector<8x128xf32>
    %3 = tpu.matmul %1, %2, %cst {dimension_numbers = #tpu.dot_dimension_numbers<[1], [0], [0], [1], [0, 0, 1, 1], [], []>} : vector<8x8xbf16>, vector<8x128xbf16>, vector<8x128xf32> -> vector<8x128xf32>
    %c0_3 = arith.constant 0 : index
    %c0_4 = arith.constant 0 : index
    %4 = vector.load %arg7[%c0_3, %c0_4] : memref<1x896xf32, #tpu.memory_space<vmem>>, vector<1x128xf32>
    %5 = vector.broadcast %4 : vector<1x128xf32> to vector<8x128xf32>
    %6 = arith.addf %3, %5 : vector<8x128xf32>
    %7 = math.tanh %6 : vector<8x128xf32>
    %8 = arith.truncf %7 : vector<8x128xf32> to vector<8x128xbf16>
    %c0_5 = arith.constant 0 : index
    %c0_6 = arith.constant 0 : index
    %9 = vector.load %arg3[%c0_5, %c0_6] : memref<128x256xbf16, #tpu.memory_space<vmem>>, vector<128x256xbf16>
    %cst_7 = arith.constant dense<0.000000e+00> : vector<8x256xf32>
    %10 = tpu.matmul %8, %9, %cst_7 {dimension_numbers = #tpu.dot_dimension_numbers<[1], [0], [0], [1], [0, 0, 1, 1], [], []>} : vector<8x128xbf16>, vector<128x256xbf16>, vector<8x256xf32> -> vector<8x256xf32>
    %c0_8 = arith.constant 0 : index
    %c128 = arith.constant 128 : index
    %11 = vector.load %arg7[%c0_8, %c128] : memref<1x896xf32, #tpu.memory_space<vmem>>, vector<1x256xf32>
    %12 = vector.broadcast %11 : vector<1x256xf32> to vector<8x256xf32>
    %13 = arith.addf %10, %12 : vector<8x256xf32>
    %14 = math.tanh %13 : vector<8x256xf32>
    %15 = arith.truncf %14 : vector<8x256xf32> to vector<8x256xbf16>
    %c0_9 = arith.constant 0 : index
    %c0_10 = arith.constant 0 : index
    %16 = vector.load %arg4[%c0_9, %c0_10] : memref<256x256xbf16, #tpu.memory_space<vmem>>, vector<256x256xbf16>
    %cst_11 = arith.constant dense<0.000000e+00> : vector<8x256xf32>
    %17 = tpu.matmul %15, %16, %cst_11 {dimension_numbers = #tpu.dot_dimension_numbers<[1], [0], [0], [1], [0, 0, 1, 1], [], []>} : vector<8x256xbf16>, vector<256x256xbf16>, vector<8x256xf32> -> vector<8x256xf32>
    %c0_12 = arith.constant 0 : index
    %c384 = arith.constant 384 : index
    %18 = vector.load %arg7[%c0_12, %c384] : memref<1x896xf32, #tpu.memory_space<vmem>>, vector<1x256xf32>
    %19 = vector.broadcast %18 : vector<1x256xf32> to vector<8x256xf32>
    %20 = arith.addf %17, %19 : vector<8x256xf32>
    %21 = math.tanh %20 : vector<8x256xf32>
    %22 = arith.truncf %21 : vector<8x256xf32> to vector<8x256xbf16>
    %c0_13 = arith.constant 0 : index
    %c0_14 = arith.constant 0 : index
    %23 = vector.load %arg5[%c0_13, %c0_14] : memref<256x128xbf16, #tpu.memory_space<vmem>>, vector<256x128xbf16>
    %cst_15 = arith.constant dense<0.000000e+00> : vector<8x128xf32>
    %24 = tpu.matmul %22, %23, %cst_15 {dimension_numbers = #tpu.dot_dimension_numbers<[1], [0], [0], [1], [0, 0, 1, 1], [], []>} : vector<8x256xbf16>, vector<256x128xbf16>, vector<8x128xf32> -> vector<8x128xf32>
    %c0_16 = arith.constant 0 : index
    %c640 = arith.constant 640 : index
    %25 = vector.load %arg7[%c0_16, %c640] : memref<1x896xf32, #tpu.memory_space<vmem>>, vector<1x128xf32>
    %26 = vector.broadcast %25 : vector<1x128xf32> to vector<8x128xf32>
    %27 = arith.addf %24, %26 : vector<8x128xf32>
    %28 = math.tanh %27 : vector<8x128xf32>
    %29 = arith.truncf %28 : vector<8x128xf32> to vector<8x128xbf16>
    %c0_17 = arith.constant 0 : index
    %c0_18 = arith.constant 0 : index
    %30 = vector.load %arg6[%c0_17, %c0_18] : memref<128x128xbf16, #tpu.memory_space<vmem>>, vector<128x128xbf16>
    %cst_19 = arith.constant dense<0.000000e+00> : vector<8x128xf32>
    %31 = tpu.matmul %29, %30, %cst_19 {dimension_numbers = #tpu.dot_dimension_numbers<[1], [0], [0], [1], [0, 0, 1, 1], [], []>} : vector<8x128xbf16>, vector<128x128xbf16>, vector<8x128xf32> -> vector<8x128xf32>
    %c0_20 = arith.constant 0 : index
    %c768 = arith.constant 768 : index
    %32 = vector.load %arg7[%c0_20, %c768] : memref<1x896xf32, #tpu.memory_space<vmem>>, vector<1x128xf32>
    %33 = vector.broadcast %32 : vector<1x128xf32> to vector<8x128xf32>
    %34 = arith.addf %31, %33 : vector<8x128xf32>
    %35 = arith.negf %34 : vector<8x128xf32>
    %36 = math.exp %35 : vector<8x128xf32>
    %cst_21 = arith.constant 1.000000e+00 : f32
    %37 = vector.broadcast %cst_21 : f32 to vector<8x128xf32>
    %38 = arith.addf %37, %36 : vector<8x128xf32>
    %39 = arith.divf %37, %38 : vector<8x128xf32>
    %40 = arith.truncf %39 : vector<8x128xf32> to vector<8x128xbf16>
    %c0_22 = arith.constant 0 : index
    %c0_23 = arith.constant 0 : index
    %41 = vector.load %arg8[%c0_22, %c0_23] : memref<8x128xbf16, #tpu.memory_space<vmem>>, vector<8x128xbf16>
    tpu.vector_store %arg8[%c0_22, %c0_23], %40 {strides = array<i32>} : memref<8x128xbf16, #tpu.memory_space<vmem>>, vector<8x128xbf16>,
    return
  }
  func.func @transform_0(%arg0: i32) -> (i32, i32) {
    %c0_i32 = arith.constant 0 : i32
    %c0_i32_0 = arith.constant 0 : i32
    return %arg0, %c0_i32 : i32, i32
  }
  func.func @transform_1(%arg0: i32) -> (i32, i32) {
    %c0_i32 = arith.constant 0 : i32
    %c0_i32_0 = arith.constant 0 : i32
    %c0_i32_1 = arith.constant 0 : i32
    return %c0_i32, %c0_i32_0 : i32, i32
  }
  func.func @transform_2(%arg0: i32) -> (i32, i32) {
    %c0_i32 = arith.constant 0 : i32
    %c0_i32_0 = arith.constant 0 : i32
    %c0_i32_1 = arith.constant 0 : i32
    return %c0_i32, %c0_i32_0 : i32, i32
  }
  func.func @transform_3(%arg0: i32) -> (i32, i32) {
    %c0_i32 = arith.constant 0 : i32
    %c0_i32_0 = arith.constant 0 : i32
    %c0_i32_1 = arith.constant 0 : i32
    return %c0_i32, %c0_i32_0 : i32, i32
  }
  func.func @transform_4(%arg0: i32) -> (i32, i32) {
    %c0_i32 = arith.constant 0 : i32
    %c0_i32_0 = arith.constant 0 : i32
    %c0_i32_1 = arith.constant 0 : i32
    return %c0_i32, %c0_i32_0 : i32, i32
  }
  func.func @transform_5(%arg0: i32) -> (i32, i32) {
    %c0_i32 = arith.constant 0 : i32
    %c0_i32_0 = arith.constant 0 : i32
    %c0_i32_1 = arith.constant 0 : i32
    return %c0_i32, %c0_i32_0 : i32, i32
  }
  func.func @transform_6(%arg0: i32) -> (i32, i32) {
    %c0_i32 = arith.constant 0 : i32
    %c0_i32_0 = arith.constant 0 : i32
    %c0_i32_1 = arith.constant 0 : i32
    return %c0_i32, %c0_i32_0 : i32, i32
  }
  func.func @transform_7(%arg0: i32) -> (i32, i32) {
    %c0_i32 = arith.constant 0 : i32
    %c0_i32_0 = arith.constant 0 : i32
    return %arg0, %c0_i32 : i32, i32
  }
}

</mosaic_0001>

<bundles_post_ra>
// kernel: _fused_forward.1
= control target key start
LH: loop header
LB: loop body
LE: loop exit
PB: predicated region body
PF: predicated region fallthrough
CT: control target
= control target key end

     0   :  { %12 = vsyncpa [#allocation3], 0  ;;  %s1500_s0 = inlined_call_operand.hbm [shape: f32[8,8], index: 0, kind: input, shape index: {}]   ;;  %s1501_s1 = inlined_call_operand.hbm [shape: bf16[8,128], index: 1, kind: input, shape index: {}]   ;;  %s1502_s2 = inlined_call_operand.hbm [shape: bf16[128,256], index: 2, kind: input, shape index: {}]   ;;  %s1503_s3 = inlined_call_operand.hbm [shape: bf16[256,256], index: 3, kind: input, shape index: {}]   ;;  %s1504_s4 = inlined_call_operand.hbm [shape: bf16[256,128], index: 4, kind: input, shape index: {}]   ;;  %s1505_s5 = inlined_call_operand.hbm [shape: bf16[128,128], index: 5, kind: input, shape index: {}]   ;;  %s1506_s6 = inlined_call_operand.hbm [shape: f32[1,896], index: 6, kind: input, shape index: {}]   ;;  %s1507_s7 = inlined_call_operand.hbm [shape: bf16[8,128], index: 7, kind: output, shape index: {}]  }
   0x1   :  { %13 = vsyncpa [#allocation6], 0 }
   0x2   :  { %14 = vsyncpa [#allocation9], 0 }
   0x3   :  { %15 = vsyncpa [#allocation12], 0  ;;  %s33_s26 = sshll.u32 %s1501_s1, 4  ;;  %s34_s26 = int_to_ptr.hbm [resolvable:$true] %s33_s26 }
   0x4   :  { %16 = vsyncpa [#allocation4], 0  ;;  %s1424_s27 = smov [#allocation5]   ;;  %s56_s8 = sshll.u32 %s1503_s3, 4  ;;  %s57_s8 = int_to_ptr.hbm [resolvable:$true] %s56_s8 }
   0x5   :  { %s35_s28 = sshll.u32 %s1424_s27, 4  ;;  %s1425_s9 = smov [#allocation8]   ;;  %s36_s28 = int_to_ptr.vmem [resolvable:$true] %s35_s28 }
   0x6   :  { %38 = dma.hbm_to_vmem [thread:$0]  %s34_s26, 64, %s36_s28, [#allocation6]  }
   0x7   :  { %s58_s10 = sshll.u32 %s1425_s9, 4  ;;  %s1426_s11 = smov 128   ;;  %s59_s10 = int_to_ptr.vmem [resolvable:$true] %s58_s10 }
   0x8   :  { %s1427_s12 = smov 8   ;;  %s82_s1 = sshll.u32 %s1505_s5, 4  ;;  %s83_s1 = int_to_ptr.hbm [resolvable:$true] %s82_s1 }
   0x9   :  { %64 = dma.hbm_to_vmem [thread:$0]  %s57_s8, 4096, %s59_s10, [#allocation9], %s1426_s11, %s1426_s11, %s1427_s12  }
   0xa   :  { %s1428_s15 = smov [#allocation11]   ;;  %s22_s19 = sshll.u32 %s1500_s0, 4  ;;  %s23_s19 = int_to_ptr.hbm [resolvable:$true] %s22_s19 }
   0xb   :  { %s84_s16 = sshll.u32 %s1428_s15, 4  ;;  %s1429_s3 = smov 64   ;;  %s85_s16 = int_to_ptr.vmem [resolvable:$true] %s84_s16 }
   0xc   :  { %s1430_s20 = smov 4   ;;  %s1431_s21 = smov [#allocation2]  }
   0xd   :  { %90 = dma.hbm_to_vmem [thread:$0]  %s83_s1, 1024, %s85_s16, [#allocation12], %s1429_s3, %s1429_s3, %s1430_s20  }
   0xe   :  { %s24_s22 = sshll.u32 %s1431_s21, 4  ;;  %s43_s25 = sshll.u32 %s1502_s2, 4  ;;  %s25_s22 = int_to_ptr.vmem [resolvable:$true] %s24_s22  ;;  %s44_s25 = int_to_ptr.hbm [resolvable:$true] %s43_s25 }
   0xf   :  { %27 = dma.hbm_to_vmem [thread:$0]  %s23_s19, 128, %s25_s22, [#allocation3]  }
  0x10   :  { %s69_s27 = sshll.u32 %s1504_s4, 4  ;;  %s1432_s28 = smov [#allocation7]   ;;  %s70_s27 = int_to_ptr.hbm [resolvable:$true] %s69_s27 }
  0x11   :  { %s45_s29 = sshll.u32 %s1432_s28, 4  ;;  %s1433_s0 = smov [#allocation10]   ;;  %s46_s29 = int_to_ptr.vmem [resolvable:$true] %s45_s29 }
  0x12   :  { %51 = dma.hbm_to_vmem [thread:$0]  %s44_s25, 2048, %s46_s29, [#allocation6], %s1426_s11, %s1426_s11, %s1427_s12  }
  0x13   :  { %s71_s30 = sshll.u32 %s1433_s0, 4  ;;  %s96_s10 = sshll.u32 %s1506_s6, 4  ;;  %s72_s30 = int_to_ptr.vmem [resolvable:$true] %s71_s30  ;;  %s97_s10 = int_to_ptr.hbm [resolvable:$true] %s96_s10 }
  0x14   :  { %77 = dma.hbm_to_vmem [thread:$0]  %s70_s27, 2048, %s72_s30, [#allocation9], %s1429_s3, %s1429_s3, %s1430_s20  }
  0x15   :  { %s1434_s2 = smov [#allocation13]  }
  0x16   :  { %s98_s13 = sshll.u32 %s1434_s2, 4  ;;  %s99_s13 = int_to_ptr.vmem [resolvable:$true] %s98_s13 }
  0x17   :  { %101 = dma.hbm_to_vmem [thread:$0]  %s97_s10, 112, %s99_s13, [#allocation12]  }
  0x18   :  { %1414 = dma.done.wait [#allocation3], 128  }
  0x19   :  { %1415 = vsyncadd [#allocation3], 4294967168 }
  0x1a   :  { %1416 = dma.done.wait [#allocation6], 2112  }
  0x1b   :  { %1417 = vsyncadd [#allocation6], 4294965184 }
  0x1c   :  { %1418 = dma.done.wait [#allocation9], 6144  }
  0x1d   :  { %1419 = vsyncadd [#allocation9], 4294961152 }
  0x1e   :  { %1420 = dma.done.wait [#allocation12], 1136  }
  0x1f   :  { %1421 = vsyncadd [#allocation12], 4294966160  ;;  %vm142_vm0 = vcmask 1043456   ;;  %v133_v0 = vld [vmem:[#allocation5] sm:$0xf]  ;;  %v131_v1 = vld [vmem:[#allocation2] sm:$0xff] }
  0x20   :  { %v888_v2 = vld [vmem:[#allocation7 + $0x70] sm:$0xf]  ;;  %v144_v3 = vsel %vm142_vm0, %v133_v0, 0  ;;  %v132_v4 = vpack.c.bf16 %v131_v1, %v131_v1  ;;  %vm138_vm1 = vcmask 64512   ;;  %v1134_v5 = vld [vmem:[#allocation7 + $0x74] sm:$0xf0] }
  0x21   :  { %v1133_v6 = vld [vmem:[#allocation7 + $0x74] sm:$0xf]  ;;  %153 = vmatpush.bf16.msra.mxu0 %v144_v3  ;;  %v889_v7 = vor.u32 %v1134_v5, %v888_v2  ;;  %v890_v8 = vld [vmem:[#allocation7 + $0x78] sm:$0xf0]  ;;  %v880_v9 = vld [vmem:[#allocation7 + $0x60] sm:$0xf] }
  0x22   :  { %v1132_v10 = vld [vmem:[#allocation7 + $0x64] sm:$0xf0]  ;;  %v893_v11 = vor.u32 %v1133_v6, %v890_v8  ;;  %v1131_v12 = vld [vmem:[#allocation7 + $0x64] sm:$0xf]  ;;  %v882_v13 = vld [vmem:[#allocation7 + $0x68] sm:$0xf0] }
  0x23   :  { %263 = vmatpush.bf16.msra.mxu1 %v889_v7  ;;  %v881_v14 = vor.u32 %v1132_v10, %v880_v9  ;;  %v885_v15 = vor.u32 %v1131_v12, %v882_v13  ;;  %v872_v16 = vld [vmem:[#allocation7 + $0x50] sm:$0xf]  ;;  %v1130_v17 = vld [vmem:[#allocation7 + $0x54] sm:$0xf0]  ;;  %v1129_v18 = vld [vmem:[#allocation7 + $0x54] sm:$0xf] }
  0x24   :  { %829 = vmatmul.msk.bf16.vlgmr.msra.gmra.mxu0 %vm138_vm1, %v132_v4  ;;  %276 = vmatpush.bf16.msra.mxu2 %v893_v11  ;;  %v874_v19 = vld [vmem:[#allocation7 + $0x58] sm:$0xf0]  ;;  %v873_v20 = vor.u32 %v1130_v17, %v872_v16  ;;  %v864_v22 = vld [vmem:[#allocation7 + $0x40] sm:$0xf]  ;;  %v1128_v23 = vld [vmem:[#allocation7 + $0x44] sm:$0xf0] }
  0x25   :  { %v877_v21 = vor.u32 %v1129_v18, %v874_v19  ;;  %v1127_v24 = vld [vmem:[#allocation7 + $0x44] sm:$0xf]  ;;  %v866_v25 = vld [vmem:[#allocation7 + $0x48] sm:$0xf0]  ;;  %v865_v26 = vor.u32 %v1128_v23, %v864_v22  ;;  %v856_v28 = vld [vmem:[#allocation7 + $0x30] sm:$0xf] }
  0x26   :  { %v869_v27 = vor.u32 %v1127_v24, %v866_v25  ;;  %v1126_v29 = vld [vmem:[#allocation7 + $0x34] sm:$0xf0]  ;;  %v1125_v30 = vld [vmem:[#allocation7 + $0x34] sm:$0xf]  ;;  %v858_v31 = vld [vmem:[#allocation7 + $0x38] sm:$0xf0] }
  0x27   :  { %264 = vmatpush.bf16.msra.mxu1 %v881_v14  ;;  %v857_v32 = vor.u32 %v1126_v29, %v856_v28  ;;  %v861_v33 = vor.u32 %v1125_v30, %v858_v31  ;;  %v848_v34 = vld [vmem:[#allocation7 + $0x20] sm:$0xf]  ;;  %v1124_v35 = vld [vmem:[#allocation7 + $0x24] sm:$0xf0]  ;;  %v1123_v36 = vld [vmem:[#allocation7 + $0x24] sm:$0xf] }
  0x28   :  { %277 = vmatpush.bf16.msra.mxu2 %v885_v15  ;;  %v849_v37 = vor.u32 %v1124_v35, %v848_v34  ;;  %v850_v38 = vld [vmem:[#allocation7 + $0x28] sm:$0xf0]  ;;  %v840_v40 = vld [vmem:[#allocation7 + $0x10] sm:$0xf]  ;;  %v1122_v41 = vld [vmem:[#allocation7 + $0x14] sm:$0xf0] }
  0x29   :  { %v853_v39 = vor.u32 %v1123_v36, %v850_v38  ;;  %v1121_v42 = vld [vmem:[#allocation7 + $0x14] sm:$0xf]  ;;  %v841_v43 = vor.u32 %v1122_v41, %v840_v40  ;;  %v842_v44 = vld [vmem:[#allocation7 + $0x18] sm:$0xf0]  ;;  %v832_v46 = vld [vmem:[#allocation7] sm:$0xf] }
  0x2a   :  { %v845_v45 = vor.u32 %v1121_v42, %v842_v44  ;;  %v1120_v47 = vld [vmem:[#allocation7 + $0x4] sm:$0xf0]  ;;  %v1119_v48 = vld [vmem:[#allocation7 + $0x4] sm:$0xf]  ;;  %v834_v50 = vld [vmem:[#allocation7 + $0x8] sm:$0xf0] }
  0x2b   :  { %265 = vmatpush.bf16.msra.mxu1 %v873_v20  ;;  %v833_v49 = vor.u32 %v1120_v47, %v832_v46  ;;  %v837_v51 = vor.u32 %v1119_v48, %v834_v50  ;;  %v952_v52 = vld [vmem:[#allocation8 + $0x70] sm:$0xf]  ;;  %v1150_v53 = vld [vmem:[#allocation8 + $0x74] sm:$0xf0]  ;;  %v1149_v54 = vld [vmem:[#allocation8 + $0x74] sm:$0xf] }
  0x2c   :  { %278 = vmatpush.bf16.msra.mxu2 %v877_v21  ;;  %v953_v55 = vor.u32 %v1150_v53, %v952_v52  ;;  %v954_v56 = vld [vmem:[#allocation8 + $0x78] sm:$0xf0]  ;;  %v944_v57 = vld [vmem:[#allocation8 + $0x60] sm:$0xf]  ;;  %v1148_v58 = vld [vmem:[#allocation8 + $0x64] sm:$0xf0] }
  0x2d   :  { %v957_v59 = vor.u32 %v1149_v54, %v954_v56  ;;  %v1147_v60 = vld [vmem:[#allocation8 + $0x64] sm:$0xf]  ;;  %v946_v61 = vld [vmem:[#allocation8 + $0x68] sm:$0xf0]  ;;  %v1016_v62 = vld [vmem:[#allocation8 + $0xf0] sm:$0xf]  ;;  %v945_v63 = vor.u32 %v1148_v58, %v944_v57 }
  0x2e   :  { %491 = vmatpush.bf16.msra.mxu3 %v953_v55  ;;  %v1166_v0 = vld [vmem:[#allocation8 + $0xf4] sm:$0xf0]  ;;  %v1165_v1 = vld [vmem:[#allocation8 + $0xf4] sm:$0xf]  ;;  %v1018_v2 = vld [vmem:[#allocation8 + $0xf8] sm:$0xf0]  ;;  %v949_v3 = vor.u32 %v1147_v60, %v946_v61 }
  0x2f   :  { %266 = vmatpush.bf16.msra.mxu1 %v865_v26  ;;  %v1017_v4 = vor.u32 %v1166_v0, %v1016_v62  ;;  %v1021_v5 = vor.u32 %v1165_v1, %v1018_v2  ;;  %v936_v6 = vld [vmem:[#allocation8 + $0x50] sm:$0xf]  ;;  %v1146_v7 = vld [vmem:[#allocation8 + $0x54] sm:$0xf0]  ;;  %v1145_v8 = vld [vmem:[#allocation8 + $0x54] sm:$0xf] }
  0x30   :  { %279 = vmatpush.bf16.msra.mxu2 %v869_v27  ;;  %v938_v9 = vld [vmem:[#allocation8 + $0x58] sm:$0xf0]  ;;  %v1008_v10 = vld [vmem:[#allocation8 + $0xe0] sm:$0xf]  ;;  %v1164_v11 = vld [vmem:[#allocation8 + $0xe4] sm:$0xf0]  ;;  %v937_v15 = vor.u32 %v1146_v7, %v936_v6 }
  0x31   :  { %504 = vmatpush.bf16.msrb.mxu0 %v1017_v4  ;;  %v1009_v12 = vor.u32 %v1164_v11, %v1008_v10  ;;  %v1163_v13 = vld [vmem:[#allocation8 + $0xe4] sm:$0xf]  ;;  %v1010_v14 = vld [vmem:[#allocation8 + $0xe8] sm:$0xf0]  ;;  %v928_v17 = vld [vmem:[#allocation8 + $0x40] sm:$0xf]  ;;  %v941_v19 = vor.u32 %v1145_v8, %v938_v9 }
  0x32   :  { %492 = vmatpush.bf16.msra.mxu3 %v945_v63  ;;  %v1013_v16 = vor.u32 %v1163_v13, %v1010_v14  ;;  %v1144_v18 = vld [vmem:[#allocation8 + $0x44] sm:$0xf0]  ;;  %v1000_v20 = vld [vmem:[#allocation8 + $0xd0] sm:$0xf]  ;;  %v1162_v21 = vld [vmem:[#allocation8 + $0xd4] sm:$0xf0] }
  0x33   :  { %267 = vmatpush.bf16.msra.mxu1 %v857_v32  ;;  %v1161_v22 = vld [vmem:[#allocation8 + $0xd4] sm:$0xf]  ;;  %v1143_v23 = vld [vmem:[#allocation8 + $0x44] sm:$0xf]  ;;  %v930_v24 = vld [vmem:[#allocation8 + $0x48] sm:$0xf0]  ;;  %v1001_v26 = vor.u32 %v1162_v21, %v1000_v20  ;;  %v929_v29 = vor.u32 %v1144_v18, %v928_v17 }
  0x34   :  { %280 = vmatpush.bf16.msra.mxu2 %v861_v33  ;;  %v1002_v25 = vld [vmem:[#allocation8 + $0xd8] sm:$0xf0]  ;;  %v992_v28 = vld [vmem:[#allocation8 + $0xc0] sm:$0xf]  ;;  %v1160_v30 = vld [vmem:[#allocation8 + $0xc4] sm:$0xf0]  ;;  %v933_v33 = vor.u32 %v1143_v23, %v930_v24 }
  0x35   :  { %505 = vmatpush.bf16.msrb.mxu0 %v1009_v12  ;;  %v1005_v27 = vor.u32 %v1161_v22, %v1002_v25  ;;  %v1159_v31 = vld [vmem:[#allocation8 + $0xc4] sm:$0xf]  ;;  %v994_v32 = vld [vmem:[#allocation8 + $0xc8] sm:$0xf0]  ;;  %v920_v34 = vld [vmem:[#allocation8 + $0x30] sm:$0xf]  ;;  %v993_v38 = vor.u32 %v1160_v30, %v992_v28 }
  0x36   :  { %493 = vmatpush.bf16.msra.mxu3 %v937_v15  ;;  %v1142_v35 = vld [vmem:[#allocation8 + $0x34] sm:$0xf0]  ;;  %v1141_v36 = vld [vmem:[#allocation8 + $0x34] sm:$0xf]  ;;  %v1203_v42 = vld [vmem:[#allocation13] ss:$0 sm:$0xff] }
  0x37   :  { %268 = vmatpush.bf16.msra.mxu1 %v849_v37  ;;  %v922_v37 = vld [vmem:[#allocation8 + $0x38] sm:$0xf0]  ;;  %v921_v40 = vor.u32 %v1142_v35, %v920_v34  ;;  %v912_v48 = vld [vmem:[#allocation8 + $0x20] sm:$0xf]  ;;  %v1139_v50 = vld [vmem:[#allocation8 + $0x24] sm:$0xf] }
  0x38   :  { %281 = vmatpush.bf16.msra.mxu2 %v853_v39  ;;  %v997_v39 = vor.u32 %v1159_v31, %v994_v32  ;;  %v925_v41 = vor.u32 %v1141_v36, %v922_v37  ;;  %v914_v52 = vld [vmem:[#allocation8 + $0x28] sm:$0xf0]  ;;  %v984_v54 = vld [vmem:[#allocation8 + $0xb0] sm:$0xf]  ;;  %v1158_v55 = vld [vmem:[#allocation8 + $0xb4] sm:$0xf0] }
  0x39   :  { %506 = vmatpush.bf16.msrb.mxu0 %v1001_v26  ;;  %v917_v53 = vor.u32 %v1139_v50, %v914_v52  ;;  %v1157_v56 = vld [vmem:[#allocation8 + $0xb4] sm:$0xf]  ;;  %v985_v57 = vor.u32 %v1158_v55, %v984_v54  ;;  %v986_v58 = vld [vmem:[#allocation8 + $0xb8] sm:$0xf0]  ;;  %v904_v60 = vld [vmem:[#allocation8 + $0x10] sm:$0xf] }
  0x3a   :  { %494 = vmatpush.bf16.msra.mxu3 %v929_v29  ;;  %v1138_v61 = vld [vmem:[#allocation8 + $0x14] sm:$0xf0]  ;;  %v1137_v62 = vld [vmem:[#allocation8 + $0x14] sm:$0xf]  ;;  %v906_v0 = vld [vmem:[#allocation8 + $0x18] sm:$0xf0] }
  0x3b   :  { %269 = vmatpush.bf16.msra.mxu1 %v841_v43  ;;  %v905_v63 = vor.u32 %v1138_v61, %v904_v60  ;;  %v909_v1 = vor.u32 %v1137_v62, %v906_v0  ;;  %v976_v2 = vld [vmem:[#allocation8 + $0xa0] sm:$0xf]  ;;  %v1155_v4 = vld [vmem:[#allocation8 + $0xa4] sm:$0xf]  ;;  %v978_v6 = vld [vmem:[#allocation8 + $0xa8] sm:$0xf0] }
  0x3c   :  { %282 = vmatpush.bf16.msra.mxu2 %v845_v45  ;;  %v981_v7 = vor.u32 %v1155_v4, %v978_v6  ;;  %v896_v8 = vld [vmem:[#allocation8] sm:$0xf]  ;;  %v1136_v9 = vld [vmem:[#allocation8 + $0x4] sm:$0xf0]  ;;  %v1135_v10 = vld [vmem:[#allocation8 + $0x4] sm:$0xf] }
  0x3d   :  { %507 = vmatpush.bf16.msrb.mxu0 %v993_v38  ;;  %v897_v11 = vor.u32 %v1136_v9, %v896_v8  ;;  %v898_v12 = vld [vmem:[#allocation8 + $0x8] sm:$0xf0]  ;;  %v968_v14 = vld [vmem:[#allocation8 + $0x90] sm:$0xf]  ;;  %v1154_v15 = vld [vmem:[#allocation8 + $0x94] sm:$0xf0] }
  0x3e   :  { %495 = vmatpush.bf16.msra.mxu3 %v921_v40  ;;  %v901_v13 = vor.u32 %v1135_v10, %v898_v12  ;;  %v969_v17 = vor.u32 %v1154_v15, %v968_v14  ;;  %v970_v18 = vld [vmem:[#allocation8 + $0x98] sm:$0xf0]  ;;  %v960_v20 = vld [vmem:[#allocation8 + $0x80] sm:$0xf]  ;;  %v1152_v21 = vld [vmem:[#allocation8 + $0x84] sm:$0xf0] }
  0x3f   :  { %270 = vmatpush.bf16.msra.mxu1 %v833_v49  ;;  %v1140_v49 = vld [vmem:[#allocation8 + $0x24] sm:$0xf0]  ;;  %v1151_v22 = vld [vmem:[#allocation8 + $0x84] sm:$0xf]  ;;  %v961_v23 = vor.u32 %v1152_v21, %v960_v20  ;;  %v962_v24 = vld [vmem:[#allocation8 + $0x88] sm:$0xf0] }
  0x40   :  { %283 = vmatpush.bf16.msra.mxu2 %v837_v51  ;;  %v913_v51 = vor.u32 %v1140_v49, %v912_v48  ;;  %v965_v25 = vor.u32 %v1151_v22, %v962_v24  ;;  %v1174_v26 = vld [vmem:[#allocation10 + $0x38] sm:$0xff]  ;;  %v1173_v28 = vld [vmem:[#allocation10 + $0x30] sm:$0xff]  ;;  %v1172_v30 = vld [vmem:[#allocation10 + $0x28] sm:$0xff]  ;;  %s1435_s4 = smov [#allocation14]   ;;  %s816_s14 = sshll.u32 %s1507_s7, 4  ;;  %s817_s14 = int_to_ptr.hbm [resolvable:$true] %s816_s14 }
  0x41   :  { %508 = vmatpush.bf16.msrb.mxu0 %v985_v57  ;;  %v1181_v29 = vld [vmem:[#allocation10 + $0x70] sm:$0xff]  ;;  %v177_v31 = vld [vmem:[#allocation13 + $0x1] sm:$0x3]  ;;  %v1178_v49 = vld [vmem:[#allocation10 + $0x58] sm:$0xff]  ;;  %s814_s6 = sshll.u32 %s1435_s4, 4  ;;  %s815_s6 = int_to_ptr.vmem [resolvable:$true] %s814_s6 }
  0x42   :  { %496 = vmatpush.bf16.msra.mxu3 %v913_v51  ;;  %v179_v32 = vperm.slane %v177_v31, 0  ;;  %v180_v35 = vperm.slane %v177_v31, 1  ;;  %v1169_v48 = vld [vmem:[#allocation10 + $0x10] sm:$0xff]  ;;  %v1168_v50 = vld [vmem:[#allocation10 + $0x8] sm:$0xff]  ;;  %v1167_v52 = vld [vmem:[#allocation10] sm:$0xff] }
  0x43   :  { %517 = vmatpush.bf16.msrb.mxu1 %v957_v59  ;;  %v989_v59 = vor.u32 %v1157_v56, %v986_v58  ;;  %v1177_v51 = vld [vmem:[#allocation10 + $0x50] sm:$0xff]  ;;  %v1175_v54 = vld [vmem:[#allocation10 + $0x40] sm:$0xff]  ;;  %v1190_v55 = vld [vmem:[#allocation11 + $0x38] sm:$0xff] }
  0x44   :  { %530 = vmatpush.bf16.msrb.mxu2 %v1021_v5  ;;  %v1189_v56 = vld [vmem:[#allocation11 + $0x30] sm:$0xff]  ;;  %v1188_v57 = vld [vmem:[#allocation11 + $0x28] sm:$0xff]  ;;  %v1187_v60 = vld [vmem:[#allocation11 + $0x20] sm:$0xff] }
  0x45   :  { %v1186_v14 = vld [vmem:[#allocation11 + $0x18] sm:$0xff]  ;;  %v1185_v15 = vld [vmem:[#allocation11 + $0x10] sm:$0xff] }
  0x46   :  { %497 = vmatpush.bf16.msra.mxu3 %v905_v63 }
  0x47   :  { %518 = vmatpush.bf16.msrb.mxu1 %v949_v3  ;;  %v1156_v3 = vld [vmem:[#allocation8 + $0xa4] sm:$0xf0] }
  0x48   :  { %531 = vmatpush.bf16.msrb.mxu2 %v1013_v16  ;;  %v977_v5 = vor.u32 %v1156_v3, %v976_v2  ;;  %v1153_v16 = vld [vmem:[#allocation8 + $0x94] sm:$0xf] }
  0x4a   :  { %509 = vmatpush.bf16.msrb.mxu0 %v977_v5  ;;  %498 = vmatpush.bf16.msra.mxu3 %v897_v11 }
  0x4b   :  { %519 = vmatpush.bf16.msrb.mxu1 %v941_v19  ;;  %v973_v19 = vor.u32 %v1153_v16, %v970_v18  ;;  %v1184_v16 = vld [vmem:[#allocation11 + $0x8] sm:$0xff]  ;;  %v1204_v18 = vld [vmem:[#allocation13 + $0x5] ss:$0 sm:$0xff] }
  0x4c   :  { %532 = vmatpush.bf16.msrb.mxu2 %v1005_v27  ;;  %v1182_v27 = vld [vmem:[#allocation10 + $0x78] sm:$0xff] }
  0x4e   :  { %510 = vmatpush.bf16.msrb.mxu0 %v969_v17  ;;  %679 = vmatpush.bf16.msrb.mxu3 %v1174_v26  ;;  %v1183_v17 = vld [vmem:[#allocation11] sm:$0xff] }
  0x4f   :  { %520 = vmatpush.bf16.msrb.mxu1 %v933_v33 }
  0x50   :  { %533 = vmatpush.bf16.msrb.mxu2 %v997_v39 }
  0x52   :  { %511 = vmatpush.bf16.msrb.mxu0 %v961_v23  ;;  %680 = vmatpush.bf16.msrb.mxu3 %v1173_v28 }
  0x53   :  { %521 = vmatpush.bf16.msrb.mxu1 %v925_v41 }
  0x54   :  { %534 = vmatpush.bf16.msrb.mxu2 %v989_v59  ;;  %v325_v59 = vld [vmem:[#allocation13 + $0x3] sm:$0x3] }
  0x55   :  { %v327_v61 = vperm.slane %v325_v59, 0  ;;  %v328_v0 = vperm.slane %v325_v59, 1 }
  0x56   :  { %692 = vmatpush.bf16.msra.mxu0 %v1182_v27  ;;  %681 = vmatpush.bf16.msrb.mxu3 %v1172_v30  ;;  %v1205_v27 = vld [vmem:[#allocation13 + $0x6] ss:$0 sm:$0xff] }
  0x57   :  { %522 = vmatpush.bf16.msrb.mxu1 %v917_v53  ;;  %v1176_v53 = vld [vmem:[#allocation10 + $0x48] sm:$0xff] }
  0x58   :  { %535 = vmatpush.bf16.msrb.mxu2 %v981_v7 }
  0x5a   :  { %693 = vmatpush.bf16.msra.mxu0 %v1181_v29 }
  0x5b   :  { %523 = vmatpush.bf16.msrb.mxu1 %v909_v1 }
  0x5c   :  { %536 = vmatpush.bf16.msrb.mxu2 %v973_v19 }
  0x5f   :  { %524 = vmatpush.bf16.msrb.mxu1 %v901_v13 }
  0x60   :  { %537 = vmatpush.bf16.msrb.mxu2 %v965_v25 }
  0xa1   :  { %v155_v43 = vpop.f32.mrf.mxu0 }
  0xa2   :  { %v156_v44 = vadd.f32 %v1203_v42, %v155_v43 }
  0xa4   :  { %1206 = vtanh.f32 %v156_v44  ;;  %v1171_v44 = vld [vmem:[#allocation10 + $0x20] sm:$0xff] }
  0xa5   :  { %682 = vmatpush.bf16.msrb.mxu3 %v1171_v44 }
  0xa9   :  { %v157_v45 = vpop.f32.mrf.mxu0 }
  0xaa   :  { %v1207_v46 = vpop.eup %1206  ;;  %v1180_v45 = vld [vmem:[#allocation10 + $0x68] sm:$0xff] }
  0xab   :  { %v160_v47 = vpack.c.bf16 %v1207_v46, %v1207_v46  ;;  %694 = vmatpush.bf16.msra.mxu0 %v1180_v45  ;;  %v1170_v46 = vld [vmem:[#allocation10 + $0x18] sm:$0xff] }
  0xac   :  { %683 = vmatpush.bf16.msrb.mxu3 %v1170_v46 }
  0xad   :  { %271 = vmatmul.bf16.vlgmr.msra.gmra.mxu1 %v160_v47  ;;  %284 = vmatmul.bf16.vlgmr.msra.gmra.mxu2 %v160_v47  ;;  %v1179_v47 = vld [vmem:[#allocation10 + $0x60] sm:$0xff] }
  0xae   :  { %775 = vmatpush.bf16.msra.mxu1 %v1190_v55 }
  0xaf   :  { %695 = vmatpush.bf16.msra.mxu0 %v1179_v47 }
  0xb0   :  { %684 = vmatpush.bf16.msrb.mxu3 %v1169_v48 }
  0xb2   :  { %776 = vmatpush.bf16.msra.mxu1 %v1189_v56 }
  0xb3   :  { %696 = vmatpush.bf16.msra.mxu0 %v1178_v49 }
  0xb4   :  { %685 = vmatpush.bf16.msrb.mxu3 %v1168_v50 }
  0xb6   :  { %777 = vmatpush.bf16.msra.mxu1 %v1188_v57 }
  0xb7   :  { %697 = vmatpush.bf16.msra.mxu0 %v1177_v51 }
  0xb8   :  { %686 = vmatpush.bf16.msrb.mxu3 %v1167_v52 }
  0xba   :  { %778 = vmatpush.bf16.msra.mxu1 %v1187_v60 }
  0xbb   :  { %698 = vmatpush.bf16.msra.mxu0 %v1176_v53 }
  0xbe   :  { %779 = vmatpush.bf16.msra.mxu1 %v1186_v14 }
  0xbf   :  { %699 = vmatpush.bf16.msra.mxu0 %v1175_v54 }
  0xc2   :  { %780 = vmatpush.bf16.msra.mxu1 %v1185_v15 }
  0xc6   :  { %781 = vmatpush.bf16.msra.mxu1 %v1184_v16 }
  0xca   :  { %782 = vmatpush.bf16.msra.mxu1 %v1183_v17 }
 0x12a   :  { %v272_v33 = vpop.f32.mrf.mxu1 }
 0x12b   :  { %v273_v34 = vadd.f32 %v272_v33, %v179_v32 }
 0x12d   :  { %1208 = vtanh.f32 %v273_v34 }
 0x130   :  { %v285_v36 = vpop.f32.mrf.mxu2 }
 0x131   :  { %v286_v37 = vadd.f32 %v285_v36, %v180_v35 }
 0x132   :  { %v274_v38 = vpop.f32.mrf.mxu1 }
 0x133   :  { %v1209_v39 = vpop.eup %1208  ;;  %1210 = vtanh.f32 %v286_v37 }
 0x134   :  { %v291_v40 = vpack.c.bf16 %v1209_v39, %v1209_v39 }
 0x136   :  { %499 = vmatmul.bf16.vlgmr.msra.gmra.mxu3 %v291_v40  ;;  %525 = vmatmul.bf16.vlgmr.msrb.gmra.mxu1 %v291_v40 }
 0x138   :  { %v287_v41 = vpop.f32.mrf.mxu2 }
 0x139   :  { %v1211_v42 = vpop.eup %1210 }
 0x13a   :  { %v292_v43 = vpack.c.bf16 %v1211_v42, %v1211_v42 }
 0x13c   :  { %512 = vmatmul.bf16.vlgmr.msrb.gmra.mxu0 %v292_v43  ;;  %538 = vmatmul.bf16.vlgmr.msrb.gmra.mxu2 %v292_v43 }
 0x1b3   :  { %v526_v58 = vpop.f32.mrf.mxu1 }
 0x1b4   :  { %v527_v4 = vadd.f32 %v526_v58, %v328_v0 }
 0x1b9   :  { %v500_v62 = vpop.f32.mrf.mxu3  ;;  %v513_v63 = vpop.f32.mrf.mxu0 }
 0x1ba   :  { %v501_v1 = vadd.f32 %v500_v62, %v327_v61 }
 0x1bb   :  { %v528_v2 = vpop.f32.mrf.mxu1 }
 0x1bc   :  { %v514_v3 = vadd.f32 %v513_v63, %v501_v1 }
 0x1be   :  { %1212 = vtanh.f32 %v514_v3 }
 0x1bf   :  { %v539_v5 = vpop.f32.mrf.mxu2 }
 0x1c0   :  { %v540_v6 = vadd.f32 %v539_v5, %v527_v4 }
 0x1c1   :  { %v502_v7 = vpop.f32.mrf.mxu3  ;;  %v515_v8 = vpop.f32.mrf.mxu0 }
 0x1c2   :  { %1214 = vtanh.f32 %v540_v6 }
 0x1c4   :  { %v1213_v9 = vpop.eup %1212 }
 0x1c5   :  { %v545_v10 = vpack.c.bf16 %v1213_v9, %v1213_v9 }
 0x1c7   :  { %v541_v11 = vpop.f32.mrf.mxu2  ;;  %687 = vmatmul.bf16.vlgmr.msrb.gmra.mxu3 %v545_v10 }
 0x1c8   :  { %v1215_v12 = vpop.eup %1214 }
 0x1c9   :  { %v546_v13 = vpack.c.bf16 %v1215_v12, %v1215_v12 }
 0x1cb   :  { %700 = vmatmul.bf16.vlgmr.msra.gmra.mxu0 %v546_v13 }
 0x248   :  { %v701_v19 = vpop.f32.mrf.mxu0 }
 0x24a   :  { %v688_v20 = vpop.f32.mrf.mxu3 }
 0x24b   :  { %v689_v21 = vadd.f32 %v1204_v18, %v688_v20 }
 0x24d   :  { %v702_v22 = vadd.f32 %v701_v19, %v689_v21 }
 0x24f   :  { %1216 = vtanh.f32 %v702_v22 }
 0x250   :  { %v703_v23 = vpop.f32.mrf.mxu0 }
 0x252   :  { %v690_v24 = vpop.f32.mrf.mxu3 }
 0x255   :  { %v1217_v25 = vpop.eup %1216 }
 0x256   :  { %v706_v26 = vpack.c.bf16 %v1217_v25, %v1217_v25 }
 0x258   :  { %783 = vmatmul.bf16.vlgmr.msra.gmra.mxu1 %v706_v26 }
 0x2d5   :  { %v784_v28 = vpop.f32.mrf.mxu1 }
 0x2d6   :  { %v785_v29 = vadd.f32 %v1205_v27, %v784_v28 }
 0x2d8   :  { %v1118_v30 = vmul.f32 -1.442695, %v785_v29 }
 0x2da   :  { %1218 = vpow2.f32 %v1118_v30 }
 0x2dd   :  { %v786_v31 = vpop.f32.mrf.mxu1 }
 0x2e0   :  { %v1219_v32 = vpop.eup %1218 }
 0x2e1   :  { %v791_v33 = vadd.f32 1.0, %v1219_v32 }
 0x2e3   :  { %1220 = vrcp.f32 %v791_v33  ;;  %v803_v37 = vand.u32 2147483648, %v791_v33  ;;  %v801_v39 = vand.u32 2147483647, %v791_v33  ;;  %vm797_vm3 = vweird.f32 %v791_v33 }
 0x2e5   :  { %v804_v41 = vor.u32 1.1754944e-38, %v803_v37  ;;  %vm802_vm5 = vcmp.eq.f32.partialorder %v801_v39, 8.507059e+37 }
 0x2e9   :  { %v1221_v34 = vpop.eup %1220 }
 0x2ea   :  { %v793_v35 = vmul.f32 %v1221_v34, %v791_v33  ;;  %vm798_vm2 = vweird.f32 %v1221_v34 }
 0x2eb   :  { %vm799_vm4 = vmor %vm797_vm3, %vm798_vm2 }
 0x2ec   :  { %v794_v36 = vsub.f32 1.0, %v793_v35 }
 0x2ee   :  { %v795_v38 = vmul.f32 %v1221_v34, %v794_v36 }
 0x2f0   :  { %v796_v40 = vadd.f32 %v1221_v34, %v795_v38 }
 0x2f2   :  { %v800_v42 = vsel %vm799_vm4, %v1221_v34, %v796_v40 }
 0x2f3   :  { %v805_v43 = vsel %vm802_vm5, %v804_v41, %v800_v42 }
 0x2f4   :  { %v807_v44 = vpack.c.bf16 %v805_v43, %v805_v43 }
 0x2f6   :  { %808 = vst [vmem:[#allocation14] sm:$0xf] %v807_v44 }
 0x2f7   :  { %819 = dma.vmem_to_hbm [thread:$0]  %s815_s6, 64, %s817_s14, [#allocation4]  }
 0x2f8   :  { %1422 = dma.done.wait [#allocation4], 64  }
 0x2f9   :  { %1423 = vsyncadd [#allocation4], 4294967232 }
 0x2fa   :  { %824 = vsyncpa [#allocation3], 1 }
 0x2fb   :  { %825 = vsyncpa [#allocation6], 1 }
 0x2fc   :  { %826 = vsyncpa [#allocation9], 1 }
 0x2fd   :  { %827 = vsyncpa [#allocation12], 1 }
 0x2fe   :  { %828 = vsyncpa [#allocation4], 1 }

</bundles_post_ra>
